<compile_context>
chip_gen: v7x
topology: tpu7x:2x2x1
jax: 0.10.0
libtpu: 0.0.40
codegen_flags: <defaults>
</compile_context>

<pallas_src>
import functools

import jax
import jax.numpy as jnp
from jax import lax
from jax.experimental import pallas as pl
from jax.experimental.pallas import tpu as pltpu


def _round_up(x, m):
    return -(-x // m) * m


def _int_pow(x, n):
    """x**n for a non-negative integer n using only VPU multiplies."""
    if n == 0:
        return jnp.ones_like(x)
    result = None
    base = x
    while n > 0:
        if n & 1:
            result = base if result is None else result * base
        n >>= 1
        if n:
            base = base * base
    return result


def _focal_elementwise(p, t, gamma, alpha):
    """Pure-JAX per-element focal loss (used for the <lanes tail and reference)."""
    p = p.astype(jnp.float32)
    t = t.astype(jnp.float32)
    return (-alpha * (1.0 - p) ** gamma * t * jnp.log(p)
            - (1.0 - alpha) * p ** gamma * (1.0 - t) * jnp.log(1.0 - p))


def _bce_focal_kernel(p_ref, t_ref, out_ref, *, alpha, gamma, acc_rows,
                      valid_rows, may_need_mask):
    # p_ref/t_ref: (tr, lanes) tiles of the flattened inputs (native dtype).
    # out_ref:     (acc_rows, lanes) f32 per-lane partial-sum accumulator,
    #              resident across the reduction (i) axis.
    c = pl.program_id(0)            # "parallel" partial axis (per-core on v7x)
    i = pl.program_id(1)            # "arbitrary" reduction axis
    n_tiles = pl.num_programs(1)

    @pl.when(i == 0)
    def _init():
        out_ref[...] = jnp.zeros_like(out_ref)

    p = p_ref[...].astype(jnp.float32)
    t = t_ref[...].astype(jnp.float32)
    one_m_p = 1.0 - p

    g = float(gamma)
    if g == int(g) and g >= 0.0:
        gi = int(g)
        w_pos = _int_pow(one_m_p, gi)      # (1-p)^gamma via repeated multiply
        w_neg = _int_pow(p, gi)            # p^gamma
    else:
        # Non-integer gamma: fall back to pow (EUP exp/log pair).
        w_pos = one_m_p ** g
        w_neg = p ** g

    # Negation folded into the constants: -alpha and -(1-alpha) == alpha - 1.
    loss = ((-alpha) * w_pos * t * jnp.log(p)
            + (alpha - 1.0) * w_neg * (1.0 - t) * jnp.log(one_m_p))

    tr, lanes = loss.shape

    def _accum(x):
        if tr == acc_rows:
            out_ref[...] += x
        else:
            # Fold row groups with pure VPU adds (sublane-tile aligned).
            out_ref[...] += jnp.sum(
                x.reshape(tr // acc_rows, acc_rows, lanes), axis=0)

    if may_need_mask:
        row_start = (c * n_tiles + i) * tr
        needs_mask = row_start + tr > valid_rows

        @pl.when(jnp.logical_not(needs_mask))
        def _fast():
            _accum(loss)

        @pl.when(needs_mask)
        def _masked_tail():
            # Only the (at most one) partially/fully OOB tile pays for this.
            row = row_start + lax.broadcasted_iota(jnp.int32, (tr, 1), 0)
            _accum(jnp.where(row < valid_rows, loss, 0.0))
    else:
        _accum(loss)


def bce_focal_loss(predict, target, gamma=2.0, alpha=0.25, reduction="mean",
                   *, lanes=512, tile_rows=1024, num_partials=1):
    """Pallas TPU forward of BCEFocalLoss (reduction='mean' or 'sum')."""
    # TODO(synk): reduction='none' (unreduced per-element output) is not
    # implemented as a kernel output; only the scalar reductions are.
    if reduction not in ("mean", "sum"):
        raise NotImplementedError("only reduction='mean'/'sum' supported")

    p1 = predict.reshape(-1)
    t1 = target.reshape(-1)
    if t1.dtype == jnp.bool_:
        t1 = t1.astype(p1.dtype)
    total = int(p1.shape[0])
    scale = (1.0 / total) if reduction == "mean" else 1.0

    rows = total // lanes
    main = rows * lanes
    tail = total - main

    # Tail (< lanes elements, usually zero) handled in plain JAX.
    if tail:
        tail_sum = jnp.sum(_focal_elementwise(p1[main:], t1[main:], gamma, alpha))
    else:
        tail_sum = jnp.float32(0.0)

    if rows == 0:
        return (tail_sum * scale).astype(jnp.float32)

    # Free bitcast-reshape when total % lanes == 0 (no pad, no dtype copy).
    p2 = (p1 if tail == 0 else p1[:main]).reshape(rows, lanes)
    t2 = (t1 if tail == 0 else t1[:main]).reshape(rows, lanes)

    tile_rows = _round_up(max(int(tile_rows), 8), 8)
    if rows <= tile_rows:
        tr = rows                       # single full-extent block (any size)
        n_blocks = 1
    else:
        tr = tile_rows                  # multiple of 8
        n_blocks = -(-rows // tr)       # last block may be partially OOB

    acc_rows = 8 if tr % 8 == 0 else tr
    nc = max(1, min(int(num_partials), n_blocks))
    n_tiles = -(-n_blocks // nc)
    may_need_mask = (n_blocks * tr != rows) or (nc * n_tiles != n_blocks)

    if nc * n_tiles == n_blocks:
        in_map = lambda c, i: (c * n_tiles + i, 0)
    else:
        # Clamp so no block index runs past the array; the over-run tiles'
        # contributions are zeroed by the in-kernel row mask.
        in_map = lambda c, i: (jnp.minimum(c * n_tiles + i, n_blocks - 1), 0)

    kernel = functools.partial(
        _bce_focal_kernel, alpha=float(alpha), gamma=float(gamma),
        acc_rows=acc_rows, valid_rows=rows, may_need_mask=may_need_mask)

    in_bytes = tr * lanes * (p2.dtype.itemsize + t2.dtype.itemsize)
    vmem_limit = int(min(64 * 1024 * 1024, max(32 * 1024 * 1024, 3 * in_bytes)))

    partials = pl.pallas_call(
        kernel,
        out_shape=jax.ShapeDtypeStruct((nc * acc_rows, lanes), jnp.float32),
        grid=(nc, n_tiles),
        in_specs=[
            pl.BlockSpec((tr, lanes), in_map),
            pl.BlockSpec((tr, lanes), in_map),
        ],
        out_specs=pl.BlockSpec((acc_rows, lanes), lambda c, i: (c, 0)),
        compiler_params=pltpu.CompilerParams(
            dimension_semantics=("parallel", "arbitrary"),
            vmem_limit_bytes=vmem_limit),
        cost_estimate=pl.CostEstimate(
            flops=int(12 * main),
            transcendentals=int(2 * main),
            bytes_accessed=int(main * (p2.dtype.itemsize + t2.dtype.itemsize)
                               + 4 * nc * acc_rows * lanes)),
    )(p2, t2)

    # Single cross-lane reduce + scaling, done once outside the kernel.
    return ((jnp.sum(partials) + tail_sum) * scale).astype(jnp.float32)


def _reference(predict, target, gamma=2.0, alpha=0.25, reduction="mean"):
    loss = _focal_elementwise(predict, target, gamma, alpha)
    if reduction == "mean":
        return jnp.mean(loss)
    if reduction == "sum":
        return jnp.sum(loss)
    return loss


if __name__ == "__main__":
    key = jax.random.PRNGKey(0)
    k1, k2, k3, k4, k5, k6 = jax.random.split(key, 6)
    gamma, alpha = 2.0, 0.25

    # Main check: the module-spec shape (batch=2, channels=4, 16x16), mean.
    shape = (2, 4, 16, 16)
    predict = jax.nn.sigmoid(jax.random.normal(k1, shape, dtype=jnp.float32))
    target = jax.random.bernoulli(k2, 0.5, shape).astype(jnp.float32)
    loss = bce_focal_loss(predict, target, gamma=gamma, alpha=alpha,
                          reduction="mean")
    loss = jax.block_until_ready(loss)
    ref = _reference(predict, target, gamma, alpha, "mean")
    assert jnp.allclose(loss, ref, atol=1e-5, rtol=1e-5), (loss, ref)

    # Extra check: multi-tile grid with a partially-OOB last block (mask path).
    p2 = jax.nn.sigmoid(jax.random.normal(k3, (12, 512), dtype=jnp.float32))
    t2 = jax.random.bernoulli(k4, 0.5, (12, 512)).astype(jnp.float32)
    l2 = jax.block_until_ready(
        bce_focal_loss(p2, t2, gamma=gamma, alpha=alpha, reduction="mean",
                       tile_rows=8))
    r2 = _reference(p2, t2, gamma, alpha, "mean")
    assert jnp.allclose(l2, r2, atol=1e-5, rtol=1e-5), (l2, r2)

    # Extra check: non-divisible total (JAX tail path) with reduction='sum'.
    p3 = jax.nn.sigmoid(jax.random.normal(k5, (5, 600), dtype=jnp.float32))
    t3 = jax.random.bernoulli(k6, 0.5, (5, 600)).astype(jnp.float32)
    l3 = jax.block_until_ready(
        bce_focal_loss(p3, t3, gamma=gamma, alpha=alpha, reduction="sum"))
    r3 = _reference(p3, t3, gamma, alpha, "sum")
    assert jnp.allclose(l3, r3, atol=1e-4, rtol=1e-5), (l3, r3)

    print("KERNEL_OK")
</pallas_src>

<mosaic_0001>
module attributes {stable_mosaic.version = 11 : i64} {
  func.func @_bce_focal_kernel(%arg0: i32, %arg1: i32, %arg2: memref<4x512xf32, #tpu.memory_space<vmem>>, %arg3: memref<4x512xf32, #tpu.memory_space<vmem>>, %arg4: memref<4x512xf32, #tpu.memory_space<vmem>>) attributes {dimension_semantics = [#tpu.dimension_semantics<parallel>, #tpu.dimension_semantics<arbitrary>], iteration_bounds = array<i64: 1, 1>, scalar_prefetch = 0 : i64, scratch_operands = 0 : i64, tpu.core_type = #tpu.core_type<tc>, window_params = [{transform_indices = @transform_0, window_bounds = array<i64: 4, 512>}, {transform_indices = @transform_1, window_bounds = array<i64: 4, 512>}, {transform_indices = @transform_2, window_bounds = array<i64: 4, 512>}]} {
    %c0_i32 = arith.constant 0 : i32
    %0 = arith.cmpi eq, %arg1, %c0_i32 : i32
    %1 = arith.extui %0 : i1 to i32
    %c0_i32_0 = arith.constant 0 : i32
    %2 = arith.cmpi ne, %1, %c0_i32_0 : i32
    scf.if %2 {
      %cst_11 = arith.constant 0.000000e+00 : f32
      %25 = vector.broadcast %cst_11 : f32 to vector<4x512xf32>
      %c0_12 = arith.constant 0 : index
      %c0_13 = arith.constant 0 : index
      %26 = vector.load %arg4[%c0_12, %c0_13] : memref<4x512xf32, #tpu.memory_space<vmem>>, vector<4x512xf32>
      tpu.vector_store %arg4[%c0_12, %c0_13], %25 {strides = array<i32>} : memref<4x512xf32, #tpu.memory_space<vmem>>, vector<4x512xf32>,
    } else {
    }
    %c0 = arith.constant 0 : index
    %c0_1 = arith.constant 0 : index
    %3 = vector.load %arg2[%c0, %c0_1] : memref<4x512xf32, #tpu.memory_space<vmem>>, vector<4x512xf32>
    %c0_2 = arith.constant 0 : index
    %c0_3 = arith.constant 0 : index
    %4 = vector.load %arg3[%c0_2, %c0_3] : memref<4x512xf32, #tpu.memory_space<vmem>>, vector<4x512xf32>
    %cst = arith.constant 1.000000e+00 : f32
    %5 = vector.broadcast %cst : f32 to vector<4x512xf32>
    %6 = arith.subf %5, %3 : vector<4x512xf32>
    %7 = arith.mulf %6, %6 : vector<4x512xf32>
    %8 = arith.mulf %3, %3 : vector<4x512xf32>
    %cst_4 = arith.constant -2.500000e-01 : f32
    %9 = vector.broadcast %cst_4 : f32 to vector<4x512xf32>
    %10 = arith.mulf %9, %7 : vector<4x512xf32>
    %11 = arith.mulf %10, %4 : vector<4x512xf32>
    %12 = math.log %3 : vector<4x512xf32>
    %13 = arith.mulf %11, %12 : vector<4x512xf32>
    %cst_5 = arith.constant -7.500000e-01 : f32
    %14 = vector.broadcast %cst_5 : f32 to vector<4x512xf32>
    %15 = arith.mulf %14, %8 : vector<4x512xf32>
    %cst_6 = arith.constant 1.000000e+00 : f32
    %16 = vector.broadcast %cst_6 : f32 to vector<4x512xf32>
    %17 = arith.subf %16, %4 : vector<4x512xf32>
    %18 = arith.mulf %15, %17 : vector<4x512xf32>
    %19 = math.log %6 : vector<4x512xf32>
    %20 = arith.mulf %18, %19 : vector<4x512xf32>
    %21 = arith.addf %13, %20 : vector<4x512xf32>
    %c0_7 = arith.constant 0 : index
    %c0_8 = arith.constant 0 : index
    %22 = vector.load %arg4[%c0_7, %c0_8] : memref<4x512xf32, #tpu.memory_space<vmem>>, vector<4x512xf32>
    %23 = arith.addf %22, %21 : vector<4x512xf32>
    %c0_9 = arith.constant 0 : index
    %c0_10 = arith.constant 0 : index
    %24 = vector.load %arg4[%c0_9, %c0_10] : memref<4x512xf32, #tpu.memory_space<vmem>>, vector<4x512xf32>
    tpu.vector_store %arg4[%c0_9, %c0_10], %23 {strides = array<i32>} : memref<4x512xf32, #tpu.memory_space<vmem>>, vector<4x512xf32>,
    return
  }
  func.func @transform_0(%arg0: i32, %arg1: i32) -> (i32, i32) {
    %c1_i32 = arith.constant 1 : i32
    %0 = arith.muli %arg0, %c1_i32 : i32
    %1 = arith.addi %0, %arg1 : i32
    %c0_i32 = arith.constant 0 : i32
    %c0_i32_0 = arith.constant 0 : i32
    return %1, %c0_i32 : i32, i32
  }
  func.func @transform_1(%arg0: i32, %arg1: i32) -> (i32, i32) {
    %c1_i32 = arith.constant 1 : i32
    %0 = arith.muli %arg0, %c1_i32 : i32
    %1 = arith.addi %0, %arg1 : i32
    %c0_i32 = arith.constant 0 : i32
    %c0_i32_0 = arith.constant 0 : i32
    return %1, %c0_i32 : i32, i32
  }
  func.func @transform_2(%arg0: i32, %arg1: i32) -> (i32, i32) {
    %c0_i32 = arith.constant 0 : i32
    %c0_i32_0 = arith.constant 0 : i32
    return %arg0, %c0_i32 : i32, i32
  }
}

</mosaic_0001>

<bundles_post_ra>
// kernel: tpu_custom_call.1
= control target key start
LH: loop header
LB: loop body
LE: loop exit
PB: predicated region body
PF: predicated region fallthrough
CT: control target
= control target key end

     0   :  { %7 = vsyncpa [#allocation3], 0  ;;  %s246_s0 = inlined_call_operand.hbm [shape: f32[4,512], index: 0, kind: input, shape index: {}]   ;;  %s247_s1 = inlined_call_operand.hbm [shape: f32[4,512], index: 1, kind: input, shape index: {}]   ;;  %s248_s2 = inlined_call_operand.hbm [shape: f32[4,512], index: 2, kind: output, shape index: {}]  }
   0x1   :  { %8 = vsyncpa [#allocation6], 0 }
   0x2   :  { %9 = vsyncpa [#allocation4], 0  ;;  %s192_s9 = smov [#allocation2]   ;;  %s193_s11 = smov [#allocation5]  }
   0x3   :  { %s20_s10 = sshll.u32 %s192_s9, 4  ;;  %s34_s12 = sshll.u32 %s193_s11, 4  ;;  %s21_s10 = int_to_ptr.vmem [resolvable:$true] %s20_s10  ;;  %s35_s12 = int_to_ptr.vmem [resolvable:$true] %s34_s12 }
   0x4   :  { %s120_s15 = scalar_lea.hbm %s246_s0, 256 }
   0x5   :  { %p121_p0 = scmp.ne.s32.totalorder %s246_s0, %s120_s15  ;;  %p124_p1 = scmp.lt.u32.totalorder %s120_s15, %s246_s0 }
   0x7   :  { %p126_p2 = pnand %p124_p1, %p121_p0 }
   0x9   :  { %129 = shalt.err (!%p126_p2)
}
   0xa   :  { %s130_s20 = scalar_lea.vmem %s21_s10, 256  ;;  %p135_p4 = scmp.lt.s32.totalorder %s21_s10, %s21_s10 }
   0xb   :  { %p131_p3 = scmp.ne.s32.totalorder %s21_s10, %s130_s20  ;;  %p136_p5 = scmp.lt.s32.totalorder %s130_s20, %s130_s20 }
   0xd   :  { %p137_p6 = por %p136_p5, %p135_p4 }
   0xf   :  { %p138_p7 = pnand %p137_p6, %p131_p3 }
  0x11   :  { %141 = shalt.err (!%p138_p7)
}
  0x12   :  { %23 = dma.hbm_to_vmem [thread:$0]  %s246_s0, 256, %s21_s10, [#allocation3]  }
  0x13   :  { %s142_s25 = scalar_lea.hbm %s247_s1, 256 }
  0x14   :  { %p143_p8 = scmp.ne.s32.totalorder %s247_s1, %s142_s25  ;;  %p146_p9 = scmp.lt.u32.totalorder %s142_s25, %s247_s1 }
  0x16   :  { %p148_p10 = pnand %p146_p9, %p143_p8 }
  0x18   :  { %151 = shalt.err (!%p148_p10)
}
  0x19   :  { %s152_s30 = scalar_lea.vmem %s35_s12, 256  ;;  %p157_p12 = scmp.lt.s32.totalorder %s35_s12, %s35_s12 }
  0x1a   :  { %p153_p11 = scmp.ne.s32.totalorder %s35_s12, %s152_s30  ;;  %p158_p13 = scmp.lt.s32.totalorder %s152_s30, %s152_s30 }
  0x1c   :  { %p159_p0 = por %p158_p13, %p157_p12 }
  0x1e   :  { %p160_p1 = pnand %p159_p0, %p153_p11 }
  0x20   :  { %163 = shalt.err (!%p160_p1)
}
  0x21   :  { %37 = dma.hbm_to_vmem [thread:$0]  %s247_s1, 256, %s35_s12, [#allocation6]  }
  0x22   :  { %186 = dma.done.wait [#allocation3], 256  }
  0x23   :  { %187 = vsyncadd [#allocation3], 4294967040 }
  0x24   :  { %188 = dma.done.wait [#allocation6], 256  }
  0x25   :  { %189 = vsyncadd [#allocation6], 4294967040  ;;  %v52_v0 = vld [vmem:[#allocation2] sm:$0xff]  ;;  %v53_v1 = vld [vmem:[#allocation2 + $0x8] sm:$0xff]  ;;  %s194_s1 = smov [#allocation7]  }
  0x26   :  { %v56_v2 = vsub.f32 1.0, %v52_v0  ;;  %112 = vlog2.f32 %v52_v0  ;;  %v57_v3 = vsub.f32 1.0, %v53_v1  ;;  %v60_v5 = vmul.f32 %v52_v0, %v52_v0  ;;  %v54_v7 = vld [vmem:[#allocation5] sm:$0xff]  ;;  %v55_v10 = vld [vmem:[#allocation5 + $0x8] sm:$0xff]  ;;  %s98_s4 = sshll.u32 %s194_s1, 4  ;;  %s99_s4 = int_to_ptr.vmem [resolvable:$true] %s98_s4 }
  0x27   :  { %114 = vlog2.f32 %v53_v1  ;;  %v61_v8 = vmul.f32 %v53_v1, %v53_v1  ;;  %v74_v13 = vsub.f32 1.0, %v54_v7  ;;  %v75_v15 = vsub.f32 1.0, %v55_v10  ;;  %s164_s5 = scalar_lea.vmem %s99_s4, 256  ;;  %p169_p3 = scmp.lt.s32.totalorder %s99_s4, %s99_s4 }
  0x28   :  { %v58_v4 = vmul.f32 %v56_v2, %v56_v2  ;;  %116 = vlog2.f32 %v56_v2  ;;  %v59_v6 = vmul.f32 %v57_v3, %v57_v3  ;;  %v72_v12 = vmul.f32 -0.75, %v60_v5  ;;  %p165_p2 = scmp.ne.s32.totalorder %s99_s4, %s164_s5  ;;  %p170_p4 = scmp.lt.s32.totalorder %s164_s5, %s164_s5 }
  0x29   :  { %118 = vlog2.f32 %v57_v3  ;;  %v73_v14 = vmul.f32 -0.75, %v61_v8 }
  0x2a   :  { %v62_v9 = vmul.f32 -0.25, %v58_v4  ;;  %v63_v11 = vmul.f32 -0.25, %v59_v6  ;;  %v76_v21 = vmul.f32 %v74_v13, %v72_v12  ;;  %p171_p5 = por %p170_p4, %p169_p3 }
  0x2b   :  { %v77_v24 = vmul.f32 %v75_v15, %v73_v14 }
  0x2c   :  { %v64_v16 = vmul.f32 %v62_v9, %v54_v7  ;;  %v65_v18 = vmul.f32 %v63_v11, %v55_v10  ;;  %p172_p6 = pnand %p171_p5, %p165_p2 }
  0x30   :  { %v113_v17 = vpop.eup %112 }
  0x31   :  { %v115_v19 = vpop.eup %114  ;;  %v67_v20 = vmul.f32 0.6931472, %v113_v17 }
  0x32   :  { %v117_v22 = vpop.eup %116  ;;  %v69_v23 = vmul.f32 0.6931472, %v115_v19 }
  0x33   :  { %v119_v25 = vpop.eup %118  ;;  %v70_v26 = vmul.f32 %v67_v20, %v64_v16  ;;  %v79_v27 = vmul.f32 0.6931472, %v117_v22 }
  0x34   :  { %v71_v28 = vmul.f32 %v69_v23, %v65_v18  ;;  %v81_v29 = vmul.f32 0.6931472, %v119_v25 }
  0x35   :  { %v82_v30 = vmul.f32 %v79_v27, %v76_v21 }
  0x36   :  { %v83_v31 = vmul.f32 %v81_v29, %v77_v24 }
  0x37   :  { %v84_v32 = vadd.f32 %v82_v30, %v70_v26 }
  0x38   :  { %v85_v33 = vadd.f32 %v83_v31, %v71_v28 }
  0x39   :  { %90 = vst [vmem:[#allocation7] sm:$0xff] %v84_v32 }
  0x3a   :  { %91 = vst [vmem:[#allocation7 + $0x8] sm:$0xff] %v85_v33 }
  0x3b   :  { %175 = shalt.err (!%p172_p6)
}
  0x3c   :  { %s176_s8 = scalar_lea.hbm %s248_s2, 256 }
  0x3d   :  { %p177_p7 = scmp.ne.s32.totalorder %s248_s2, %s176_s8  ;;  %p180_p8 = scmp.lt.u32.totalorder %s176_s8, %s248_s2 }
  0x3f   :  { %p182_p9 = pnand %p180_p8, %p177_p7 }
  0x41   :  { %185 = shalt.err (!%p182_p9)
}
  0x42   :  { %101 = dma.vmem_to_hbm [thread:$0]  %s99_s4, 256, %s248_s2, [#allocation4]  }
  0x43   :  { %190 = dma.done.wait [#allocation4], 256  }
  0x44   :  { %191 = vsyncadd [#allocation4], 4294967040 }
  0x45   :  { %105 = vsyncpa [#allocation3], 1 }
  0x46   :  { %106 = vsyncpa [#allocation6], 1 }
  0x47   :  { %107 = vsyncpa [#allocation4], 1 }

</bundles_post_ra>
